<compile_context>
chip_gen: v6e
topology: v6e:2x2x1
jax: 0.10.0
libtpu: 0.0.40
codegen_flags: <defaults>
</compile_context>

<pallas_src>
import jax
import jax.numpy as jnp
from jax.experimental import pallas as pl
from jax.experimental.pallas import tpu as pltpu


def basic_block_kernel(xp_ref, wb1_ref, wb2_ref, pool_ref, bcast_ref,
                       g1_ref, b1_ref, g2_ref, b2_ref,
                       out_ref, pad2_ref):
    N, Hp2, WC = xp_ref.shape
    H = Hp2 - 2
    C = pool_ref.shape[1]
    W = WC // C
    M = N * H
    inv_count = jnp.float32(1.0 / (M * W))     # 1 / samples-per-channel
    eps = jnp.float32(1e-5)

    def conv3x3(src_ref, wb_ref):
        # dx taps + W zero padding are folded into the banded weight; the 3 dy
        # taps are stacked along lanes so the conv is ONE MXU matmul with
        # K = 3*WC, bf16 operands, f32 accumulation (no VMEM accumulator).
        patch = jnp.concatenate(
            [src_ref[:, dy:dy + H, :].reshape(M, WC) for dy in range(3)],
            axis=-1).astype(jnp.bfloat16)                          # (M, 3*WC)
        return jnp.dot(patch, wb_ref[...],
                       preferred_element_type=jnp.float32)         # (M, WC) f32

    def bn_affine(a, g_ref, b_ref):
        # Training-mode BatchNorm (batch stats, biased variance) folded into a
        # single FMA: a*scale + shift.  One stacked pool matmul + one stacked
        # bcast matmul replace four separate micro-matmuls.
        s = jnp.sum(a, axis=0, keepdims=True)                       # (1, WC)
        ssq = jnp.sum(a * a, axis=0, keepdims=True)                 # (1, WC)
        stats_c = jnp.dot(jnp.concatenate([s, ssq], axis=0), pool_ref[...],
                          preferred_element_type=jnp.float32) * inv_count  # (2, C)
        mean_c = stats_c[0:1, :]
        var_c = stats_c[1:2, :] - mean_c * mean_c
        inv_c = jax.lax.rsqrt(var_c + eps)
        scale_c = inv_c * g_ref[...]                                # (1, C)
        shift_c = b_ref[...] - mean_c * scale_c                     # (1, C)
        sc_sh = jnp.dot(jnp.concatenate([scale_c, shift_c], axis=0),
                        bcast_ref[...],
                        preferred_element_type=jnp.float32)         # (2, WC)
        return a * sc_sh[0:1, :] + sc_sh[1:2, :]

    # ---- conv1 -> bn1 -> relu, written straight into conv2's padded input ----
    a1 = conv3x3(xp_ref, wb1_ref)
    out1 = jnp.maximum(bn_affine(a1, g1_ref, b1_ref), 0.0)
    pad2_ref[:, 1:H + 1, :] = out1.reshape(N, H, WC)
    pad2_ref[:, 0:1, :] = jnp.zeros((N, 1, WC), jnp.float32)
    pad2_ref[:, H + 1:H + 2, :] = jnp.zeros((N, 1, WC), jnp.float32)

    # ---- conv2 -> bn2 -> identity residual (downsample=None) -> relu ----
    a2 = conv3x3(pad2_ref, wb2_ref)
    y = bn_affine(a2, g2_ref, b2_ref)
    res = xp_ref[:, 1:H + 1, :].reshape(M, WC)        # residual stays f32
    out_ref[...] = jnp.maximum(y + res, 0.0)


def _banded_dx_weights(w_hwio, W):
    """Fold the 3 dx taps and the W zero-padding of a 3x3 HWIO conv weight into
    a banded (W*Cin, W*Cout) matrix per dy row, stacked along K ->
    (3*W*Cin, W*Cout)."""
    dx = jnp.arange(3)[:, None, None]
    w_in = jnp.arange(W)[None, :, None]
    w_out = jnp.arange(W)[None, None, :]
    sel = (w_in == w_out + dx - 1).astype(w_hwio.dtype)          # (3, W, W)
    banded = jnp.einsum('dio,ydck->yicok', sel, w_hwio)          # (3, W, Cin, W, Cout)
    Cin, Cout = w_hwio.shape[2], w_hwio.shape[3]
    return banded.reshape(3 * W * Cin, W * Cout)


@jax.jit
def basic_block_forward(x_nhwc, w1, g1, b1, w2, g2, b2):
    """x_nhwc: (N, H, W, Cin) f32. w*: (3,3,Cin,Cout) HWIO. g*/b*: (Cout,)."""
    N, H, W, C = x_nhwc.shape
    Cout = w1.shape[-1]
    assert C == Cout, "identity residual requires inplanes == planes"
    WC = W * C

    # H-only zero pad (W padding is folded into the banded weights); lane-dense
    # (N, H+2, W*C) layout prepared in the wrapper, not in the kernel.
    xp = jnp.pad(x_nhwc, ((0, 0), (1, 1), (0, 0), (0, 0))).reshape(N, H + 2, WC)

    # bf16 MXU operands (halves weight DMA/VMEM); accumulation stays f32.
    wb1 = _banded_dx_weights(w1, W).astype(jnp.bfloat16)
    wb2 = _banded_dx_weights(w2, W).astype(jnp.bfloat16)

    # Constant per-channel pooling / broadcast matrices for the BN reductions.
    lane_c = jnp.arange(WC) % C
    pool = (lane_c[:, None] == jnp.arange(C)[None, :]).astype(jnp.float32)  # (WC, C)
    bcast = pool.T                                                          # (C, WC)

    vmem = pl.BlockSpec(memory_space=pltpu.MemorySpace.VMEM)
    out = pl.pallas_call(
        basic_block_kernel,
        out_shape=jax.ShapeDtypeStruct((N * H, WC), jnp.float32),
        in_specs=[vmem] * 9,
        out_specs=vmem,
        scratch_shapes=[
            pltpu.VMEM((N, H + 2, WC), jnp.float32),   # conv2 padded input
        ],
    )(xp, wb1, wb2, pool, bcast,
      g1.reshape(1, C), b1.reshape(1, C), g2.reshape(1, C), b2.reshape(1, C))

    return out.reshape(N, H, W, C)


def basic_block_reference(x_nhwc, w1, g1, b1, w2, g2, b2,
                          conv_dtype=jnp.float32):
    """Pure-JAX reference (NHWC, training-mode BN). conv_dtype=jnp.bfloat16
    reproduces the kernel's bf16 MXU operands (f32 accumulation)."""
    def conv3x3(x, w):
        return jax.lax.conv_general_dilated(
            x.astype(conv_dtype), w.astype(conv_dtype),
            window_strides=(1, 1), padding=[(1, 1), (1, 1)],
            dimension_numbers=("NHWC", "HWIO", "NHWC"),
            preferred_element_type=jnp.float32)

    def bn(y, g, b):
        mean = jnp.mean(y, axis=(0, 1, 2))
        var = jnp.var(y, axis=(0, 1, 2))  # biased, like PyTorch normalization
        return (y - mean) * jax.lax.rsqrt(var + 1e-5) * g + b

    out = jax.nn.relu(bn(conv3x3(x_nhwc, w1), g1, b1))
    out = bn(conv3x3(out, w2), g2, b2)
    return jax.nn.relu(out + x_nhwc)


if __name__ == "__main__":
    # Small shapes consistent with BasicBlock(inplanes=8, planes=8, stride=1).
    # W*C = 128 -> the kernel's working set is exactly lane-dense.
    N, H, W, C = 2, 16, 16, 8

    key = jax.random.PRNGKey(0)
    kx, kw1, kw2 = jax.random.split(key, 3)

    # Input in PyTorch NCHW, transposed to NHWC for the kernel wrapper.
    x_nchw = jax.random.normal(kx, (N, C, H, W), dtype=jnp.float32)
    x_nhwc = jnp.transpose(x_nchw, (0, 2, 3, 1))

    # Conv weights (bias=False), kaiming-ish scale, deterministic.
    fan_in = C * 3 * 3
    w1 = jax.random.normal(kw1, (3, 3, C, C), dtype=jnp.float32) * (2.0 / fan_in) ** 0.5
    w2 = jax.random.normal(kw2, (3, 3, C, C), dtype=jnp.float32) * (2.0 / fan_in) ** 0.5

    # BatchNorm2d default init: weight=1, bias=0.
    g1 = jnp.ones((C,), jnp.float32)
    b1 = jnp.zeros((C,), jnp.float32)
    g2 = jnp.ones((C,), jnp.float32)
    b2 = jnp.zeros((C,), jnp.float32)

    out = jax.block_until_ready(basic_block_forward(x_nhwc, w1, g1, b1, w2, g2, b2))
    assert out.shape == (N, H, W, C)

    # Tight check vs a reference using the same bf16 conv operands (validates
    # the kernel logic), plus a looser sanity check vs the pure-f32 module.
    ref_matched = jax.block_until_ready(
        basic_block_reference(x_nhwc, w1, g1, b1, w2, g2, b2, conv_dtype=jnp.bfloat16))
    ref_f32 = jax.block_until_ready(
        basic_block_reference(x_nhwc, w1, g1, b1, w2, g2, b2, conv_dtype=jnp.float32))

    err_matched = float(jnp.max(jnp.abs(out - ref_matched)))
    err_f32 = float(jnp.max(jnp.abs(out - ref_f32)))
    assert err_matched < 5e-3, f"mismatch vs bf16-matched reference: {err_matched}"
    assert err_f32 < 5e-2, f"mismatch vs f32 reference: {err_f32}"

    print("KERNEL_OK")
</pallas_src>

<mosaic_0001>
module attributes {stable_mosaic.version = 11 : i64} {
  func.func @basic_block_kernel(%arg0: memref<2x18x128xf32, #tpu.memory_space<vmem>>, %arg1: memref<384x128xbf16, #tpu.memory_space<vmem>>, %arg2: memref<384x128xbf16, #tpu.memory_space<vmem>>, %arg3: memref<128x8xf32, #tpu.memory_space<vmem>>, %arg4: memref<8x128xf32, #tpu.memory_space<vmem>>, %arg5: memref<1x8xf32, #tpu.memory_space<vmem>>, %arg6: memref<1x8xf32, #tpu.memory_space<vmem>>, %arg7: memref<1x8xf32, #tpu.memory_space<vmem>>, %arg8: memref<1x8xf32, #tpu.memory_space<vmem>>, %arg9: memref<32x128xf32, #tpu.memory_space<vmem>>, %arg10: memref<2x18x128xf32, #tpu.memory_space<vmem>>) attributes {dimension_semantics = [], scalar_prefetch = 0 : i64, scratch_operands = 1 : i64, tpu.core_type = #tpu.core_type<tc>} {
    %c0 = arith.constant 0 : index
    %c0_0 = arith.constant 0 : index
    %c0_1 = arith.constant 0 : index
    %0 = vector.load %arg0[%c0, %c0_0, %c0_1] : memref<2x18x128xf32, #tpu.memory_space<vmem>>, vector<2x16x128xf32>
    %1 = vector.shape_cast %0 : vector<2x16x128xf32> to vector<32x128xf32>
    %c0_2 = arith.constant 0 : index
    %c1 = arith.constant 1 : index
    %c0_3 = arith.constant 0 : index
    %2 = vector.load %arg0[%c0_2, %c1, %c0_3] : memref<2x18x128xf32, #tpu.memory_space<vmem>>, vector<2x16x128xf32>
    %3 = vector.shape_cast %2 : vector<2x16x128xf32> to vector<32x128xf32>
    %c0_4 = arith.constant 0 : index
    %c2 = arith.constant 2 : index
    %c0_5 = arith.constant 0 : index
    %4 = vector.load %arg0[%c0_4, %c2, %c0_5] : memref<2x18x128xf32, #tpu.memory_space<vmem>>, vector<2x16x128xf32>
    %5 = vector.shape_cast %4 : vector<2x16x128xf32> to vector<32x128xf32>
    %6 = tpu.concatenate %1, %3, %5 in 1 : vector<32x128xf32>, vector<32x128xf32>, vector<32x128xf32> -> vector<32x384xf32>
    %7 = arith.truncf %6 : vector<32x384xf32> to vector<32x384xbf16>
    %c0_6 = arith.constant 0 : index
    %c0_7 = arith.constant 0 : index
    %8 = vector.load %arg1[%c0_6, %c0_7] : memref<384x128xbf16, #tpu.memory_space<vmem>>, vector<384x128xbf16>
    %cst = arith.constant dense<0.000000e+00> : vector<32x128xf32>
    %9 = tpu.matmul %7, %8, %cst {dimension_numbers = #tpu.dot_dimension_numbers<[1], [0], [0], [1], [0, 0, 1, 1], [], []>} : vector<32x384xbf16>, vector<384x128xbf16>, vector<32x128xf32> -> vector<32x128xf32>
    %cst_8 = arith.constant dense<0.000000e+00> : vector<128xf32>
    %10 = vector.multi_reduction <add>, %9, %cst_8 [0] : vector<32x128xf32> to vector<128xf32>
    %11 = vector.shape_cast %10 : vector<128xf32> to vector<1x128xf32>
    %12 = arith.mulf %9, %9 : vector<32x128xf32>
    %cst_9 = arith.constant dense<0.000000e+00> : vector<128xf32>
    %13 = vector.multi_reduction <add>, %12, %cst_9 [0] : vector<32x128xf32> to vector<128xf32>
    %14 = vector.shape_cast %13 : vector<128xf32> to vector<1x128xf32>
    %15 = tpu.concatenate %11, %14 in 0 : vector<1x128xf32>, vector<1x128xf32> -> vector<2x128xf32>
    %c0_10 = arith.constant 0 : index
    %c0_11 = arith.constant 0 : index
    %16 = vector.load %arg3[%c0_10, %c0_11] : memref<128x8xf32, #tpu.memory_space<vmem>>, vector<128x8xf32>
    %cst_12 = arith.constant dense<0.000000e+00> : vector<2x8xf32>
    %17 = tpu.matmul %15, %16, %cst_12 {dimension_numbers = #tpu.dot_dimension_numbers<[1], [0], [0], [1], [0, 0, 1, 1], [], []>} : vector<2x128xf32>, vector<128x8xf32>, vector<2x8xf32> -> vector<2x8xf32>
    %cst_13 = arith.constant 0.001953125 : f32
    %18 = vector.broadcast %cst_13 : f32 to vector<2x8xf32>
    %19 = arith.mulf %17, %18 : vector<2x8xf32>
    %20 = vector.extract_strided_slice %19 {offsets = [0, 0], sizes = [1, 8], strides = [1, 1]} : vector<2x8xf32> to vector<1x8xf32>
    %21 = vector.extract_strided_slice %19 {offsets = [1, 0], sizes = [1, 8], strides = [1, 1]} : vector<2x8xf32> to vector<1x8xf32>
    %22 = arith.mulf %20, %20 : vector<1x8xf32>
    %23 = arith.subf %21, %22 : vector<1x8xf32>
    %cst_14 = arith.constant 9.99999974E-6 : f32
    %24 = vector.broadcast %cst_14 : f32 to vector<1x8xf32>
    %25 = arith.addf %23, %24 : vector<1x8xf32>
    %26 = math.rsqrt %25 : vector<1x8xf32>
    %c0_15 = arith.constant 0 : index
    %c0_16 = arith.constant 0 : index
    %27 = vector.load %arg5[%c0_15, %c0_16] : memref<1x8xf32, #tpu.memory_space<vmem>>, vector<1x8xf32>
    %28 = arith.mulf %26, %27 : vector<1x8xf32>
    %c0_17 = arith.constant 0 : index
    %c0_18 = arith.constant 0 : index
    %29 = vector.load %arg6[%c0_17, %c0_18] : memref<1x8xf32, #tpu.memory_space<vmem>>, vector<1x8xf32>
    %30 = arith.mulf %20, %28 : vector<1x8xf32>
    %31 = arith.subf %29, %30 : vector<1x8xf32>
    %32 = tpu.concatenate %28, %31 in 0 : vector<1x8xf32>, vector<1x8xf32> -> vector<2x8xf32>
    %c0_19 = arith.constant 0 : index
    %c0_20 = arith.constant 0 : index
    %33 = vector.load %arg4[%c0_19, %c0_20] : memref<8x128xf32, #tpu.memory_space<vmem>>, vector<8x128xf32>
    %cst_21 = arith.constant dense<0.000000e+00> : vector<2x128xf32>
    %34 = tpu.matmul %32, %33, %cst_21 {dimension_numbers = #tpu.dot_dimension_numbers<[1], [0], [0], [1], [0, 0, 1, 1], [], []>} : vector<2x8xf32>, vector<8x128xf32>, vector<2x128xf32> -> vector<2x128xf32>
    %35 = vector.extract_strided_slice %34 {offsets = [0, 0], sizes = [1, 128], strides = [1, 1]} : vector<2x128xf32> to vector<1x128xf32>
    %36 = vector.broadcast %35 : vector<1x128xf32> to vector<32x128xf32>
    %37 = arith.mulf %9, %36 : vector<32x128xf32>
    %38 = vector.extract_strided_slice %34 {offsets = [1, 0], sizes = [1, 128], strides = [1, 1]} : vector<2x128xf32> to vector<1x128xf32>
    %39 = vector.broadcast %38 : vector<1x128xf32> to vector<32x128xf32>
    %40 = arith.addf %37, %39 : vector<32x128xf32>
    %cst_22 = arith.constant 0.000000e+00 : f32
    %41 = vector.broadcast %cst_22 : f32 to vector<32x128xf32>
    %42 = arith.maximumf %40, %41 : vector<32x128xf32>
    %43 = vector.shape_cast %42 : vector<32x128xf32> to vector<2x16x128xf32>
    %c0_23 = arith.constant 0 : index
    %c1_24 = arith.constant 1 : index
    %c0_25 = arith.constant 0 : index
    %44 = vector.load %arg10[%c0_23, %c1_24, %c0_25] : memref<2x18x128xf32, #tpu.memory_space<vmem>>, vector<2x16x128xf32>
    tpu.vector_store %arg10[%c0_23, %c1_24, %c0_25], %43 {strides = array<i32>} : memref<2x18x128xf32, #tpu.memory_space<vmem>>, vector<2x16x128xf32>,
    %cst_26 = arith.constant 0.000000e+00 : f32
    %45 = vector.broadcast %cst_26 : f32 to vector<2x1x128xf32>
    %c0_27 = arith.constant 0 : index
    %c0_28 = arith.constant 0 : index
    %c0_29 = arith.constant 0 : index
    %46 = vector.load %arg10[%c0_27, %c0_28, %c0_29] : memref<2x18x128xf32, #tpu.memory_space<vmem>>, vector<2x1x128xf32>
    tpu.vector_store %arg10[%c0_27, %c0_28, %c0_29], %45 {strides = array<i32>} : memref<2x18x128xf32, #tpu.memory_space<vmem>>, vector<2x1x128xf32>,
    %cst_30 = arith.constant 0.000000e+00 : f32
    %47 = vector.broadcast %cst_30 : f32 to vector<2x1x128xf32>
    %c0_31 = arith.constant 0 : index
    %c17 = arith.constant 17 : index
    %c0_32 = arith.constant 0 : index
    %48 = vector.load %arg10[%c0_31, %c17, %c0_32] : memref<2x18x128xf32, #tpu.memory_space<vmem>>, vector<2x1x128xf32>
    tpu.vector_store %arg10[%c0_31, %c17, %c0_32], %47 {strides = array<i32>} : memref<2x18x128xf32, #tpu.memory_space<vmem>>, vector<2x1x128xf32>,
    %c0_33 = arith.constant 0 : index
    %c0_34 = arith.constant 0 : index
    %c0_35 = arith.constant 0 : index
    %49 = vector.load %arg10[%c0_33, %c0_34, %c0_35] : memref<2x18x128xf32, #tpu.memory_space<vmem>>, vector<2x16x128xf32>
    %50 = vector.shape_cast %49 : vector<2x16x128xf32> to vector<32x128xf32>
    %c0_36 = arith.constant 0 : index
    %c1_37 = arith.constant 1 : index
    %c0_38 = arith.constant 0 : index
    %51 = vector.load %arg10[%c0_36, %c1_37, %c0_38] : memref<2x18x128xf32, #tpu.memory_space<vmem>>, vector<2x16x128xf32>
    %52 = vector.shape_cast %51 : vector<2x16x128xf32> to vector<32x128xf32>
    %c0_39 = arith.constant 0 : index
    %c2_40 = arith.constant 2 : index
    %c0_41 = arith.constant 0 : index
    %53 = vector.load %arg10[%c0_39, %c2_40, %c0_41] : memref<2x18x128xf32, #tpu.memory_space<vmem>>, vector<2x16x128xf32>
    %54 = vector.shape_cast %53 : vector<2x16x128xf32> to vector<32x128xf32>
    %55 = tpu.concatenate %50, %52, %54 in 1 : vector<32x128xf32>, vector<32x128xf32>, vector<32x128xf32> -> vector<32x384xf32>
    %56 = arith.truncf %55 : vector<32x384xf32> to vector<32x384xbf16>
    %c0_42 = arith.constant 0 : index
    %c0_43 = arith.constant 0 : index
    %57 = vector.load %arg2[%c0_42, %c0_43] : memref<384x128xbf16, #tpu.memory_space<vmem>>, vector<384x128xbf16>
    %cst_44 = arith.constant dense<0.000000e+00> : vector<32x128xf32>
    %58 = tpu.matmul %56, %57, %cst_44 {dimension_numbers = #tpu.dot_dimension_numbers<[1], [0], [0], [1], [0, 0, 1, 1], [], []>} : vector<32x384xbf16>, vector<384x128xbf16>, vector<32x128xf32> -> vector<32x128xf32>
    %cst_45 = arith.constant dense<0.000000e+00> : vector<128xf32>
    %59 = vector.multi_reduction <add>, %58, %cst_45 [0] : vector<32x128xf32> to vector<128xf32>
    %60 = vector.shape_cast %59 : vector<128xf32> to vector<1x128xf32>
    %61 = arith.mulf %58, %58 : vector<32x128xf32>
    %cst_46 = arith.constant dense<0.000000e+00> : vector<128xf32>
    %62 = vector.multi_reduction <add>, %61, %cst_46 [0] : vector<32x128xf32> to vector<128xf32>
    %63 = vector.shape_cast %62 : vector<128xf32> to vector<1x128xf32>
    %64 = tpu.concatenate %60, %63 in 0 : vector<1x128xf32>, vector<1x128xf32> -> vector<2x128xf32>
    %c0_47 = arith.constant 0 : index
    %c0_48 = arith.constant 0 : index
    %65 = vector.load %arg3[%c0_47, %c0_48] : memref<128x8xf32, #tpu.memory_space<vmem>>, vector<128x8xf32>
    %cst_49 = arith.constant dense<0.000000e+00> : vector<2x8xf32>
    %66 = tpu.matmul %64, %65, %cst_49 {dimension_numbers = #tpu.dot_dimension_numbers<[1], [0], [0], [1], [0, 0, 1, 1], [], []>} : vector<2x128xf32>, vector<128x8xf32>, vector<2x8xf32> -> vector<2x8xf32>
    %cst_50 = arith.constant 0.001953125 : f32
    %67 = vector.broadcast %cst_50 : f32 to vector<2x8xf32>
    %68 = arith.mulf %66, %67 : vector<2x8xf32>
    %69 = vector.extract_strided_slice %68 {offsets = [0, 0], sizes = [1, 8], strides = [1, 1]} : vector<2x8xf32> to vector<1x8xf32>
    %70 = vector.extract_strided_slice %68 {offsets = [1, 0], sizes = [1, 8], strides = [1, 1]} : vector<2x8xf32> to vector<1x8xf32>
    %71 = arith.mulf %69, %69 : vector<1x8xf32>
    %72 = arith.subf %70, %71 : vector<1x8xf32>
    %cst_51 = arith.constant 9.99999974E-6 : f32
    %73 = vector.broadcast %cst_51 : f32 to vector<1x8xf32>
    %74 = arith.addf %72, %73 : vector<1x8xf32>
    %75 = math.rsqrt %74 : vector<1x8xf32>
    %c0_52 = arith.constant 0 : index
    %c0_53 = arith.constant 0 : index
    %76 = vector.load %arg7[%c0_52, %c0_53] : memref<1x8xf32, #tpu.memory_space<vmem>>, vector<1x8xf32>
    %77 = arith.mulf %75, %76 : vector<1x8xf32>
    %c0_54 = arith.constant 0 : index
    %c0_55 = arith.constant 0 : index
    %78 = vector.load %arg8[%c0_54, %c0_55] : memref<1x8xf32, #tpu.memory_space<vmem>>, vector<1x8xf32>
    %79 = arith.mulf %69, %77 : vector<1x8xf32>
    %80 = arith.subf %78, %79 : vector<1x8xf32>
    %81 = tpu.concatenate %77, %80 in 0 : vector<1x8xf32>, vector<1x8xf32> -> vector<2x8xf32>
    %c0_56 = arith.constant 0 : index
    %c0_57 = arith.constant 0 : index
    %82 = vector.load %arg4[%c0_56, %c0_57] : memref<8x128xf32, #tpu.memory_space<vmem>>, vector<8x128xf32>
    %cst_58 = arith.constant dense<0.000000e+00> : vector<2x128xf32>
    %83 = tpu.matmul %81, %82, %cst_58 {dimension_numbers = #tpu.dot_dimension_numbers<[1], [0], [0], [1], [0, 0, 1, 1], [], []>} : vector<2x8xf32>, vector<8x128xf32>, vector<2x128xf32> -> vector<2x128xf32>
    %84 = vector.extract_strided_slice %83 {offsets = [0, 0], sizes = [1, 128], strides = [1, 1]} : vector<2x128xf32> to vector<1x128xf32>
    %85 = vector.broadcast %84 : vector<1x128xf32> to vector<32x128xf32>
    %86 = arith.mulf %58, %85 : vector<32x128xf32>
    %87 = vector.extract_strided_slice %83 {offsets = [1, 0], sizes = [1, 128], strides = [1, 1]} : vector<2x128xf32> to vector<1x128xf32>
    %88 = vector.broadcast %87 : vector<1x128xf32> to vector<32x128xf32>
    %89 = arith.addf %86, %88 : vector<32x128xf32>
    %c0_59 = arith.constant 0 : index
    %c1_60 = arith.constant 1 : index
    %c0_61 = arith.constant 0 : index
    %90 = vector.load %arg0[%c0_59, %c1_60, %c0_61] : memref<2x18x128xf32, #tpu.memory_space<vmem>>, vector<2x16x128xf32>
    %91 = vector.shape_cast %90 : vector<2x16x128xf32> to vector<32x128xf32>
    %92 = arith.addf %89, %91 : vector<32x128xf32>
    %cst_62 = arith.constant 0.000000e+00 : f32
    %93 = vector.broadcast %cst_62 : f32 to vector<32x128xf32>
    %94 = arith.maximumf %92, %93 : vector<32x128xf32>
    %c0_63 = arith.constant 0 : index
    %c0_64 = arith.constant 0 : index
    %95 = vector.load %arg9[%c0_63, %c0_64] : memref<32x128xf32, #tpu.memory_space<vmem>>, vector<32x128xf32>
    tpu.vector_store %arg9[%c0_63, %c0_64], %94 {strides = array<i32>} : memref<32x128xf32, #tpu.memory_space<vmem>>, vector<32x128xf32>,
    return
  }
}

</mosaic_0001>

<bundles_post_ra>
// kernel: basic_block_forward.1
= control target key start
LH: loop header
LB: loop body
LE: loop exit
PB: predicated region body
PF: predicated region fallthrough
CT: control target
= control target key end

     0   :  { %v1479_v42 = vmov 0.0   ;;  %vm1480_vm0 = vmmov 0   ;;  %vm363_vm1 = vcmask 1040384   ;;  %vm481_vm2 = vcmask 64512   ;;  %s1960_s1 = inlined_call_operand.vmem [shape: bf16[384,128], index: 1, kind: input, shape index: {}]   ;;  %s1961_s0 = inlined_call_operand.vmem [shape: f32[2,18,128], index: 0, kind: input, shape index: {}]   ;;  %s1962_s3 = inlined_call_operand.vmem [shape: f32[128,8], index: 3, kind: input, shape index: {}]   ;;  %s1963_s4 = inlined_call_operand.vmem [shape: f32[8,128], index: 4, kind: input, shape index: {}]   ;;  %s1964_s2 = inlined_call_operand.vmem [shape: bf16[384,128], index: 2, kind: input, shape index: {}]   ;;  %s1965_s5 = inlined_call_operand.vmem [shape: f32[1,8], index: 5, kind: input, shape index: {}]   ;;  %s1966_s6 = inlined_call_operand.vmem [shape: f32[1,8], index: 6, kind: input, shape index: {}]   ;;  %s1967_s7 = inlined_call_operand.vmem [shape: f32[1,8], index: 7, kind: input, shape index: {}]   ;;  %s1968_s8 = inlined_call_operand.vmem [shape: f32[1,8], index: 8, kind: input, shape index: {}]   ;;  %s1969_s9 = inlined_call_operand.vmem [shape: f32[32,128], index: 9, kind: output, shape index: {}]  }
   0x1   :  { %v1427_v0 = vld [vmem:[%s1960_s1 + $0x78] sm:$0xff]   ;;  %v1430_v3 = vld [vmem:[%s1960_s1 + $0x70] sm:$0xff]   ;;  %v1433_v6 = vld [vmem:[%s1960_s1 + $0x68] sm:$0xff]   ;;  %579 = vst [vmem:[#allocation2] sm:$0x1] %v1479_v42 }
   0x2   :  { %v1428_v1 = vld [vmem:[%s1960_s1 + $0xb8] sm:$0xff]   ;;  %1191 = vmatprep.subr.bf16.mxu0 %v1427_v0  ;;  %v1431_v4 = vld [vmem:[%s1960_s1 + $0xb0] sm:$0xff]   ;;  %v1434_v7 = vld [vmem:[%s1960_s1 + $0xa8] sm:$0xff]   ;;  %580 = vst [vmem:[#allocation2 + $0x18] sm:$0x1] %v1479_v42 }
   0x3   :  { %v1429_v2 = vld [vmem:[%s1960_s1 + $0x38] sm:$0xff]   ;;  %1305 = vmatprep.subr.bf16.mxu1 %v1428_v1  ;;  %v1432_v5 = vld [vmem:[%s1960_s1 + $0x30] sm:$0xff]   ;;  %v1435_v8 = vld [vmem:[%s1960_s1 + $0x28] sm:$0xff]   ;;  %581 = vst [vmem:[#allocation2 + $0x11] sm:$0x1] %v1479_v42 }
   0x4   :  { %1192 = vmatpush3.bf16.msra.mxu0 %v1429_v2  ;;  %1306 = vmatpush3.bf16.msra.mxu1 %v1428_v1  ;;  %v1436_v9 = vld [vmem:[%s1960_s1 + $0x60] sm:$0xff]   ;;  %v1439_v12 = vld [vmem:[%s1960_s1 + $0x58] sm:$0xff]   ;;  %v1442_v15 = vld [vmem:[%s1960_s1 + $0x50] sm:$0xff]   ;;  %582 = vst [vmem:[#allocation2 + $0x29] sm:$0x1] %v1479_v42 }
   0x5   :  { %1193 = vmatprep.subr.bf16.mxu0 %v1430_v3  ;;  %1307 = vmatprep.subr.bf16.mxu1 %v1431_v4  ;;  %v1437_v10 = vld [vmem:[%s1960_s1 + $0xa0] sm:$0xff]   ;;  %v1440_v13 = vld [vmem:[%s1960_s1 + $0x98] sm:$0xff]   ;;  %v1443_v16 = vld [vmem:[%s1960_s1 + $0x90] sm:$0xff]  }
   0x6   :  { %v1438_v11 = vld [vmem:[%s1960_s1 + $0x20] sm:$0xff]   ;;  %v1441_v14 = vld [vmem:[%s1960_s1 + $0x18] sm:$0xff]   ;;  %v1444_v17 = vld [vmem:[%s1960_s1 + $0x10] sm:$0xff]  }
   0x7   :  { %v1445_v18 = vld [vmem:[%s1960_s1 + $0x48] sm:$0xff]   ;;  %v1448_v24 = vld [vmem:[%s1960_s1 + $0x40] sm:$0xff]   ;;  %v35_v39 = vld [vmem:[%s1961_s0 + $0x18] sm:$0xff] }
   0x8   :  { %1194 = vmatpush3.bf16.msra.mxu0 %v1432_v5  ;;  %1308 = vmatpush3.bf16.msra.mxu1 %v1431_v4  ;;  %v1446_v19 = vld [vmem:[%s1960_s1 + $0x88] sm:$0xff]   ;;  %v1449_v25 = vld [vmem:[%s1960_s1 + $0x80] sm:$0xff]   ;;  %v1659_v43 = vld [vmem:[%s1962_s3 + $0x78] sm:$0xff] }
   0x9   :  { %1195 = vmatprep.subr.bf16.mxu0 %v1433_v6  ;;  %1309 = vmatprep.subr.bf16.mxu1 %v1434_v7  ;;  %v1447_v20 = vld [vmem:[%s1960_s1 + $0x8] sm:$0xff]   ;;  %v1450_v29 = vld [vmem:[%s1960_s1] sm:$0xff]   ;;  %v1667_v44 = vld [vmem:[%s1962_s3 + $0x70] sm:$0xff] }
   0xa   :  { %v1597_v21 = vld [vmem:[%s1961_s0 + $0x1] sm:$0xff]  ;;  %v1602_v22 = vld [vmem:[%s1961_s0 + $0x9] sm:$0xff]  ;;  %v1636_v34 = vld [vmem:[%s1961_s0 + $0x19] sm:$0xff] }
   0xb   :  { %v41_v23 = vld [vmem:[%s1961_s0 + $0x2] sm:$0xff]  ;;  %v46_v26 = vpack.c.bf16 %v1602_v22, %v1597_v21  ;;  %v42_v27 = vld [vmem:[%s1961_s0 + $0xa] sm:$0xff]  ;;  %v43_v32 = vld [vmem:[%s1961_s0 + $0x1a] sm:$0xff] }
   0xc   :  { %1196 = vmatpush3.bf16.msra.mxu0 %v1435_v8  ;;  %1310 = vmatpush3.bf16.msra.mxu1 %v1434_v7  ;;  %v47_v28 = vpack.c.bf16 %v42_v27, %v41_v23  ;;  %v33_v30 = vld [vmem:[%s1961_s0] sm:$0xff]  ;;  %v34_v31 = vld [vmem:[%s1961_s0 + $0x8] sm:$0xff]  ;;  %v1688_v47 = vld [vmem:[%s1962_s3 + $0x58] sm:$0xff] }
   0xd   :  { %1197 = vmatprep.subr.bf16.mxu0 %v1436_v9  ;;  %1311 = vmatprep.subr.bf16.mxu1 %v1437_v10  ;;  %v44_v33 = vld [vmem:[%s1961_s0 + $0x22] sm:$0xff]  ;;  %v45_v36 = vpack.c.bf16 %v34_v31, %v33_v30  ;;  %v1695_v48 = vld [vmem:[%s1962_s3 + $0x50] sm:$0xff]  ;;  %v1716_v51 = vld [vmem:[%s1962_s3 + $0x38] sm:$0xff] }
   0xe   :  { %275 = vmatprep.mubr.bf16.mxu0 %v46_v26  ;;  %v1641_v35 = vld [vmem:[%s1961_s0 + $0x21] sm:$0xff]  ;;  %1321 = vmatprep.mubr.bf16.mxu1 %v47_v28  ;;  %v50_v37 = vpack.c.bf16 %v44_v33, %v43_v32  ;;  %v1723_v52 = vld [vmem:[%s1962_s3 + $0x30] sm:$0xff]  ;;  %v1743_v55 = vld [vmem:[%s1962_s3 + $0x18] sm:$0xff] }
   0xf   :  { %v49_v38 = vpack.c.bf16 %v1641_v35, %v1636_v34  ;;  %v36_v40 = vld [vmem:[%s1961_s0 + $0x20] sm:$0xff]  ;;  %v1674_v45 = vld [vmem:[%s1962_s3 + $0x68] sm:$0xff]  ;;  %v1749_v56 = vld [vmem:[%s1962_s3 + $0x10] sm:$0xff] }
  0x10   :  { %1198 = vmatpush3.bf16.msra.mxu0 %v1438_v11  ;;  %1312 = vmatpush3.bf16.msra.mxu1 %v1437_v10  ;;  %v48_v41 = vpack.c.bf16 %v36_v40, %v35_v39  ;;  %v1681_v46 = vld [vmem:[%s1962_s3 + $0x60] sm:$0xff]  ;;  %v1702_v49 = vld [vmem:[%s1962_s3 + $0x48] sm:$0xff] }
  0x11   :  { %1199 = vmatprep.subr.bf16.mxu0 %v1439_v12  ;;  %1313 = vmatprep.subr.bf16.mxu1 %v1440_v13  ;;  %v1709_v50 = vld [vmem:[%s1962_s3 + $0x40] sm:$0xff]  ;;  %v1730_v53 = vld [vmem:[%s1962_s3 + $0x28] sm:$0xff] }
  0x12   :  { %v1737_v54 = vld [vmem:[%s1962_s3 + $0x20] sm:$0xff]  ;;  %v1760_v57 = vld [vmem:[%s1962_s3 + $0x8] sm:$0xff] }
  0x13   :  { %v1767_v58 = vld [vmem:[%s1962_s3] sm:$0xff] }
  0x14   :  { %1200 = vmatpush3.bf16.msra.mxu0 %v1441_v14  ;;  %1314 = vmatpush3.bf16.msra.mxu1 %v1440_v13 }
  0x15   :  { %1201 = vmatprep.subr.bf16.mxu0 %v1442_v15  ;;  %1315 = vmatprep.subr.bf16.mxu1 %v1443_v16 }
  0x18   :  { %1202 = vmatpush3.bf16.msra.mxu0 %v1444_v17  ;;  %1316 = vmatpush3.bf16.msra.mxu1 %v1443_v16 }
  0x19   :  { %1203 = vmatprep.subr.bf16.mxu0 %v1445_v18  ;;  %1317 = vmatprep.subr.bf16.mxu1 %v1446_v19 }
  0x1c   :  { %1204 = vmatpush3.bf16.msra.mxu0 %v1447_v20  ;;  %1318 = vmatpush3.bf16.msra.mxu1 %v1446_v19 }
  0x1d   :  { %1205 = vmatprep.subr.bf16.mxu0 %v1448_v24  ;;  %1319 = vmatprep.subr.bf16.mxu1 %v1449_v25 }
  0x20   :  { %1206 = vmatpush3.bf16.msra.mxu0 %v1450_v29  ;;  %1320 = vmatpush3.bf16.msra.mxu1 %v1449_v25 }
  0x21   :  { %1325 = vmatprep.subr.mxu0 %v1479_v42  ;;  %1360 = vmatprep.subr.mxu1 %v1479_v42 }
  0x23   :  { %276 = vmatmul.mubr.bf16.vlgmr.msra.gmra.mxu0 %v45_v36  ;;  %1322 = vmatmul.mubr.bf16.vlgmr.msra.gmra.mxu1 %v50_v37 }
  0x24   :  { %283 = vmatprep.mubr.bf16.mxu0 %v49_v38  ;;  %1326 = vmatpush3.msra.mxu0 %v1659_v43 }
  0x25   :  { %1327 = vmatprep.subr.mxu0 %v1479_v42  ;;  %1362 = vmatprep.mubr.msk.f32.mxu1 %vm1480_vm0, %v1479_v42 }
  0x26   :  { %1328 = vmatpush3.msra.mxu0 %v1667_v44 }
  0x27   :  { %1329 = vmatprep.subr.mxu0 %v1479_v42 }
  0x28   :  { %1330 = vmatpush3.msra.mxu0 %v1674_v45 }
  0x29   :  { %1331 = vmatprep.subr.mxu0 %v1479_v42 }
  0x2a   :  { %1332 = vmatpush3.msra.mxu0 %v1681_v46 }
  0x2b   :  { %284 = vmatmul.mubr.bf16.gmra.mxu0 %v48_v41  ;;  %1333 = vmatprep.subr.mxu0 %v1479_v42 }
  0x2c   :  { %1334 = vmatpush3.msra.mxu0 %v1688_v47  ;;  %1357 = vmatprep.mubr.msk.f32.mxu0 %vm1480_vm0, %v1479_v42 }
  0x2d   :  { %1335 = vmatprep.subr.mxu0 %v1479_v42 }
  0x2e   :  { %1336 = vmatpush3.msra.mxu0 %v1695_v48 }
  0x2f   :  { %1337 = vmatprep.subr.mxu0 %v1479_v42 }
  0x30   :  { %1338 = vmatpush3.msra.mxu0 %v1702_v49 }
  0x31   :  { %1339 = vmatprep.subr.mxu0 %v1479_v42 }
  0x32   :  { %1340 = vmatpush3.msra.mxu0 %v1709_v50 }
  0x33   :  { %1341 = vmatprep.subr.mxu0 %v1479_v42 }
  0x34   :  { %1342 = vmatpush3.msra.mxu0 %v1716_v51 }
  0x35   :  { %1343 = vmatprep.subr.mxu0 %v1479_v42 }
  0x36   :  { %1344 = vmatpush3.msra.mxu0 %v1723_v52 }
  0x37   :  { %1345 = vmatprep.subr.mxu0 %v1479_v42 }
  0x38   :  { %1346 = vmatpush3.msra.mxu0 %v1730_v53 }
  0x39   :  { %1347 = vmatprep.subr.mxu0 %v1479_v42 }
  0x3a   :  { %1348 = vmatpush3.msra.mxu0 %v1737_v54 }
  0x3b   :  { %1349 = vmatprep.subr.mxu0 %v1479_v42 }
  0x3c   :  { %1350 = vmatpush3.msra.mxu0 %v1743_v55 }
  0x3d   :  { %1351 = vmatprep.subr.mxu0 %v1479_v42 }
  0x3e   :  { %1352 = vmatpush3.msra.mxu0 %v1749_v56 }
  0x3f   :  { %1353 = vmatprep.subr.mxu0 %v1479_v42 }
  0x40   :  { %1354 = vmatpush3.msra.mxu0 %v1760_v57 }
  0x41   :  { %1355 = vmatprep.subr.mxu0 %v1479_v42 }
  0x42   :  { %1356 = vmatpush3.msra.mxu0 %v1767_v58 }
  0xe3   :  { %v1207_v59 = vpop.f32.mrf.mxu0  ;;  %v1323_v60 = vpop.f32.mrf.mxu1 }
  0xe5   :  { %v1208_v61 = vpop.f32.mrf.mxu0  ;;  %v326_v62 = vpop.f32.mrf.mxu1 }
  0xe6   :  { %v1209_v2 = vadd.f32 %v1208_v61, %v1207_v59  ;;  %v1796_v59 = vld [vmem:[%s1963_s4] sm:$0xff]  ;;  %v1452_v61 = vld [vmem:[%s1964_s2 + $0xb8] sm:$0xff]  }
  0xe7   :  { %v1210_v63 = vpop.f32.mrf.mxu0  ;;  %v1324_v0 = vpop.f32.mrf.mxu1  ;;  %1361 = vmatpush3.msra.mxu1 %v1796_v59  ;;  %1365 = vmatprep.subr.bf16.mxu0 %v1452_v61 }
  0xe8   :  { %v1774_v8 = vadd.f32 %v1209_v2, %v326_v62  ;;  %v1455_v62 = vld [vmem:[%s1964_s2 + $0xb0] sm:$0xff]  }
  0xe9   :  { %v1211_v1 = vpop.f32.mrf.mxu0  ;;  %v329_v4 = vpop.f32.mrf.mxu1 }
  0xea   :  { %v1212_v3 = vadd.f32 %v1211_v1, %v1210_v63  ;;  %v350_v14 = vmul.f32 %v1774_v8, %v1774_v8  ;;  %v1458_v63 = vld [vmem:[%s1964_s2 + $0xa8] sm:$0xff]  }
  0xeb   :  { %v1213_v5 = vpop.f32.mrf.mxu0 }
  0xec   :  { %v1772_v6 = vadd.f32 %v1212_v3, %v329_v4 }
  0xed   :  { %v1214_v7 = vpop.f32.mrf.mxu0 }
  0xee   :  { %v1215_v9 = vadd.f32 %v1214_v7, %v1213_v5  ;;  %v351_v11 = vmul.f32 %v1772_v6, %v1772_v6  ;;  %v341_v15 = vadd.f32 %v1772_v6, %v1774_v8 }
  0xef   :  { %v1216_v10 = vpop.f32.mrf.mxu0 }
  0xf0   :  { %v1778_v12 = vadd.f32 %v1323_v60, %v1215_v9  ;;  %v354_v18 = vadd.f32 %v351_v11, %v350_v14  ;;  %v1451_v60 = vld [vmem:[%s1964_s2 + $0x78] sm:$0xff]   ;;  %v474_v9 = vlaneseq }
  0xf1   :  { %v1217_v13 = vpop.f32.mrf.mxu0  ;;  %1248 = vmatprep.subr.bf16.mxu1 %v1451_v60  ;;  %v1470_v60 = vld [vmem:[%s1964_s2 + $0x88] sm:$0xff]  }
  0xf2   :  { %v352_v16 = vmul.f32 %v1778_v12, %v1778_v12  ;;  %v1218_v17 = vadd.f32 %v1217_v13, %v1216_v10  ;;  %v342_v19 = vadd.f32 %v341_v15, %v1778_v12  ;;  %v1163_v10 = vld [vmem:[%s1965_s5] ss:$0 sm:$0xff]  ;;  %v1814_v14 = vshrl.u32 %v474_v9, 7 }
  0xf4   :  { %v1787_v20 = vadd.f32 %v1324_v0, %v1218_v17  ;;  %v355_v23 = vadd.f32 %v354_v18, %v352_v16  ;;  %v467_v16 = vld [vmem:[%s1966_s6] sm:$0x1]  ;;  %v1820_v18 = vsub.s32 0, %v1814_v14 }
  0xf6   :  { %v343_v24 = vadd.f32 %v342_v19, %v1787_v20  ;;  %v353_v25 = vmul.f32 %v1787_v20, %v1787_v20 }
  0xf8   :  { %v344_v26 = vrot.slane %v343_v24, 4  ;;  %v356_v27 = vadd.f32 %v355_v23, %v353_v25  ;;  %v1454_v25 = vld [vmem:[%s1964_s2 + $0x70] sm:$0xff]  }
  0xfa   :  { %v345_v28 = vadd.f32 %v344_v26, %v343_v24  ;;  %v357_v29 = vrot.slane %v356_v27, 4  ;;  %v1453_v24 = vld [vmem:[%s1964_s2 + $0x38] sm:$0xff]  }
  0xfc   :  { %v346_v30 = vrot.slane %v345_v28, 2  ;;  %v358_v31 = vadd.f32 %v357_v29, %v356_v27  ;;  %v1456_v27 = vld [vmem:[%s1964_s2 + $0x30] sm:$0xff]   ;;  %v1459_v29 = vld [vmem:[%s1964_s2 + $0x28] sm:$0xff]  }
  0xfe   :  { %v347_v32 = vadd.f32 %v346_v30, %v345_v28  ;;  %v359_v33 = vrot.slane %v358_v31, 2  ;;  %v1457_v28 = vld [vmem:[%s1964_s2 + $0x68] sm:$0xff]   ;;  %v1460_v30 = vld [vmem:[%s1964_s2 + $0x60] sm:$0xff]  }
 0x100   :  { %v348_v36 = vrot.slane %v347_v32, 1  ;;  %v360_v37 = vadd.f32 %v359_v33, %v358_v31  ;;  %v1461_v31 = vld [vmem:[%s1964_s2 + $0xa0] sm:$0xff]   ;;  %v1463_v33 = vld [vmem:[%s1964_s2 + $0x58] sm:$0xff]  }
 0x102   :  { %v361_v38 = vrot.slane %v360_v37, 1  ;;  %v349_v39 = vadd.f32 %v348_v36, %v347_v32  ;;  %v1462_v32 = vld [vmem:[%s1964_s2 + $0x20] sm:$0xff]   ;;  %v1464_v36 = vld [vmem:[%s1964_s2 + $0x98] sm:$0xff]  }
 0x104   :  { %v362_v40 = vadd.f32 %v361_v38, %v360_v37  ;;  %v1465_v37 = vld [vmem:[%s1964_s2 + $0x18] sm:$0xff]   ;;  %v1466_v38 = vld [vmem:[%s1964_s2 + $0x50] sm:$0xff]  }
 0x106   :  { %v364_v41 = vsel %vm363_vm1, %v349_v39, %v362_v40  ;;  %v1467_v39 = vld [vmem:[%s1964_s2 + $0x90] sm:$0xff]  }
 0x107   :  { %1358 = vmatmul.mubr.f32.vlgmr.msra.gmra.mxu0 %v364_v41  ;;  %v1468_v40 = vld [vmem:[%s1964_s2 + $0x10] sm:$0xff]   ;;  %v1469_v41 = vld [vmem:[%s1964_s2 + $0x48] sm:$0xff]  }
 0x108   :  { %1366 = vmatpush3.bf16.msra.mxu0 %v1452_v61  ;;  %v1471_v61 = vld [vmem:[%s1964_s2 + $0x8] sm:$0xff]  }
 0x109   :  { %1367 = vmatprep.subr.bf16.mxu0 %v1455_v62 }
 0x10c   :  { %1368 = vmatpush3.bf16.msra.mxu0 %v1455_v62  ;;  %v1472_v62 = vld [vmem:[%s1964_s2 + $0x40] sm:$0xff]  }
 0x10d   :  { %1369 = vmatprep.subr.bf16.mxu0 %v1458_v63 }
 0x110   :  { %1370 = vmatpush3.bf16.msra.mxu0 %v1458_v63  ;;  %v1473_v63 = vld [vmem:[%s1964_s2 + $0x80] sm:$0xff]  }
 0x111   :  { %1371 = vmatprep.subr.bf16.mxu0 %v1461_v31 }
 0x114   :  { %1372 = vmatpush3.bf16.msra.mxu0 %v1461_v31 }
 0x115   :  { %1373 = vmatprep.subr.bf16.mxu0 %v1464_v36 }
 0x118   :  { %1374 = vmatpush3.bf16.msra.mxu0 %v1464_v36 }
 0x119   :  { %1375 = vmatprep.subr.bf16.mxu0 %v1467_v39 }
 0x11c   :  { %1376 = vmatpush3.bf16.msra.mxu0 %v1467_v39 }
 0x11d   :  { %1377 = vmatprep.subr.bf16.mxu0 %v1470_v60 }
 0x120   :  { %1378 = vmatpush3.bf16.msra.mxu0 %v1470_v60 }
 0x121   :  { %1379 = vmatprep.subr.bf16.mxu0 %v1473_v63 }
 0x124   :  { %1380 = vmatpush3.bf16.msra.mxu0 %v1473_v63 }
 0x125   :  { %1420 = vmatprep.subr.mxu0 %v1479_v42 }
 0x1c7   :  { %v447_v0 = vpop.f32.mrf.mxu0 }
 0x1c8   :  { %v451_v1 = vmul.f32 0.001953125, %v447_v0  ;;  %v1474_v0 = vld [vmem:[%s1964_s2] sm:$0xff]  }
 0x1c9   :  { %v1359_v2 = vpop.f32.mrf.mxu0 }
 0x1ca   :  { %v452_v3 = vmul.f32 %v451_v1, %v451_v1 }
 0x1cc   :  { %v454_v4 = vrot.slane %v452_v3, 7 }
 0x1ce   :  { %v456_v5 = vsub.f32 %v451_v1, %v454_v4 }
 0x1d0   :  { %v457_v7 = vadd.f32 1e-05, %v456_v5 }
 0x1d2   :  { %1475 = vrsqrt.f32 %v457_v7 }
 0x1df   :  { %v1476_v11 = vpop.eup %1475 }
 0x1e0   :  { %v466_v13 = vmul.f32 %v1476_v11, %v1163_v10 }
 0x1e2   :  { %v469_v15 = vrot.slane %v466_v13, 1 }
 0x1e4   :  { %v471_v17 = vmul.f32 %v469_v15, %v451_v1  ;;  %v565_v1 = vsub.s32 1, %v1814_v14 }
 0x1e6   :  { %v472_v19 = vsub.f32 %v467_v16, %v471_v17 }
 0x1e8   :  { %v477_v23 = vrot.slane %v472_v19, %v1820_v18 }
 0x1ea   :  { %v479_v26 = vsel %vm363_vm1, %v469_v15, %v477_v23 }
 0x1eb   :  { %1363 = vmatmul.mubr.msk.f32.vlgmr.msra.gmra.mxu1 %vm481_vm2, %v479_v26 }
 0x1ec   :  { %1249 = vmatpush3.bf16.msra.mxu1 %v1453_v24 }
 0x1ed   :  { %1250 = vmatprep.subr.bf16.mxu1 %v1454_v25 }
 0x1f0   :  { %1251 = vmatpush3.bf16.msra.mxu1 %v1456_v27 }
 0x1f1   :  { %1252 = vmatprep.subr.bf16.mxu1 %v1457_v28 }
 0x1f4   :  { %1253 = vmatpush3.bf16.msra.mxu1 %v1459_v29 }
 0x1f5   :  { %1254 = vmatprep.subr.bf16.mxu1 %v1460_v30 }
 0x1f8   :  { %1255 = vmatpush3.bf16.msra.mxu1 %v1462_v32 }
 0x1f9   :  { %1256 = vmatprep.subr.bf16.mxu1 %v1463_v33 }
 0x1fc   :  { %1257 = vmatpush3.bf16.msra.mxu1 %v1465_v37 }
 0x1fd   :  { %1258 = vmatprep.subr.bf16.mxu1 %v1466_v38 }
 0x200   :  { %1259 = vmatpush3.bf16.msra.mxu1 %v1468_v40 }
 0x201   :  { %1260 = vmatprep.subr.bf16.mxu1 %v1469_v41 }
 0x204   :  { %1261 = vmatpush3.bf16.msra.mxu1 %v1471_v61 }
 0x205   :  { %1262 = vmatprep.subr.bf16.mxu1 %v1472_v62 }
 0x208   :  { %1263 = vmatpush3.bf16.msra.mxu1 %v1474_v0 }
 0x209   :  { %1385 = vmatprep.subr.mxu1 %v1479_v42 }
 0x2ab   :  { %v551_v2 = vpop.f32.mrf.mxu1 }
 0x2ac   :  { %v558_v3 = vrot.slane %v551_v2, %v1820_v18  ;;  %v566_v4 = vrot.slane %v551_v2, %v565_v1 }
 0x2ad   :  { %v1364_v5 = vpop.f32.mrf.mxu1 }
 0x2ae   :  { %v559_v7 = vmul.f32 %v558_v3, %v1774_v8  ;;  %v560_v9 = vmul.f32 %v558_v3, %v1772_v6  ;;  %v561_v10 = vmul.f32 %v558_v3, %v1778_v12  ;;  %v562_v11 = vmul.f32 %v558_v3, %v1787_v20 }
 0x2b0   :  { %v567_v13 = vadd.f32 %v566_v4, %v559_v7  ;;  %v568_v15 = vadd.f32 %v566_v4, %v560_v9  ;;  %v569_v16 = vadd.f32 %v566_v4, %v561_v10  ;;  %v570_v17 = vadd.f32 %v566_v4, %v562_v11 }
 0x2b2   :  { %v571_v19 = vmax.f32 %v567_v13, 0.0  ;;  %v572_v23 = vmax.f32 %v568_v15, 0.0  ;;  %v573_v24 = vmax.f32 %v569_v16, 0.0  ;;  %v574_v25 = vmax.f32 %v570_v17, 0.0 }
 0x2b4   :  { %575 = vst [vmem:[#allocation2 + $0x1] sm:$0xff] %v571_v19  ;;  %576 = vst [vmem:[#allocation2 + $0x9] sm:$0xff] %v572_v23  ;;  %v596_v26 = vpack.c.bf16 %v572_v23, %v571_v19  ;;  %v599_v32 = vpack.c.bf16 %v574_v25, %v573_v24 }
 0x2b5   :  { %577 = vst [vmem:[#allocation2 + $0x19] sm:$0xff] %v573_v24  ;;  %578 = vst [vmem:[#allocation2 + $0x21] sm:$0xff] %v574_v25 }
 0x2b6   :  { %825 = vmatprep.mubr.bf16.mxu1 %v596_v26 }
 0x2bb   :  { %v591_v8 = vld [vmem:[#allocation2 + $0x2] sm:$0xff]  ;;  %v592_v6 = vld [vmem:[#allocation2 + $0xa] sm:$0xff] }
 0x2bc   :  { %v583_v27 = vld [vmem:[#allocation2] sm:$0xff]  ;;  %v597_v12 = vpack.c.bf16 %v592_v6, %v591_v8  ;;  %v584_v28 = vld [vmem:[#allocation2 + $0x8] sm:$0xff]  ;;  %v585_v33 = vld [vmem:[#allocation2 + $0x18] sm:$0xff] }
 0x2bd   :  { %v593_v20 = vld [vmem:[#allocation2 + $0x1a] sm:$0xff]  ;;  %v594_v29 = vld [vmem:[#allocation2 + $0x22] sm:$0xff]  ;;  %v595_v30 = vpack.c.bf16 %v584_v28, %v583_v27 }
 0x2be   :  { %v600_v31 = vpack.c.bf16 %v594_v29, %v593_v20  ;;  %1381 = vmatprep.mubr.bf16.mxu0 %v597_v12  ;;  %v586_v36 = vld [vmem:[#allocation2 + $0x20] sm:$0xff] }
 0x2bf   :  { %826 = vmatmul.mubr.bf16.vlgmr.msra.gmra.mxu1 %v595_v30  ;;  %v598_v37 = vpack.c.bf16 %v586_v36, %v585_v33  ;;  %v1189_v29 = vld [vmem:[%s1967_s7] ss:$0 sm:$0xff] }
 0x2c0   :  { %1382 = vmatmul.mubr.bf16.vlgmr.msra.gmra.mxu0 %v600_v31  ;;  %833 = vmatprep.mubr.bf16.mxu1 %v599_v32  ;;  %v1016_v33 = vld [vmem:[%s1968_s8] sm:$0x1] }
 0x2c1   :  { %1386 = vmatpush3.msra.mxu1 %v1659_v43  ;;  %1421 = vmatpush3.msra.mxu0 %v1796_v59 }
 0x2c2   :  { %1387 = vmatprep.subr.mxu1 %v1479_v42  ;;  %1422 = vmatprep.mubr.msk.f32.mxu0 %vm1480_vm0, %v1479_v42 }
 0x2c3   :  { %1388 = vmatpush3.msra.mxu1 %v1667_v44 }
 0x2c4   :  { %1389 = vmatprep.subr.mxu1 %v1479_v42 }
 0x2c5   :  { %1390 = vmatpush3.msra.mxu1 %v1674_v45 }
 0x2c6   :  { %1391 = vmatprep.subr.mxu1 %v1479_v42 }
 0x2c7   :  { %1392 = vmatpush3.msra.mxu1 %v1681_v46 }
 0x2c8   :  { %834 = vmatmul.mubr.bf16.gmra.mxu1 %v598_v37  ;;  %1393 = vmatprep.subr.mxu1 %v1479_v42 }
 0x2c9   :  { %1394 = vmatpush3.msra.mxu1 %v1688_v47  ;;  %1417 = vmatprep.mubr.msk.f32.mxu1 %vm1480_vm0, %v1479_v42 }
 0x2ca   :  { %1395 = vmatprep.subr.mxu1 %v1479_v42 }
 0x2cb   :  { %1396 = vmatpush3.msra.mxu1 %v1695_v48 }
 0x2cc   :  { %1397 = vmatprep.subr.mxu1 %v1479_v42 }
 0x2cd   :  { %1398 = vmatpush3.msra.mxu1 %v1702_v49 }
 0x2ce   :  { %1399 = vmatprep.subr.mxu1 %v1479_v42 }
 0x2cf   :  { %1400 = vmatpush3.msra.mxu1 %v1709_v50 }
 0x2d0   :  { %1401 = vmatprep.subr.mxu1 %v1479_v42 }
 0x2d1   :  { %1402 = vmatpush3.msra.mxu1 %v1716_v51 }
 0x2d2   :  { %1403 = vmatprep.subr.mxu1 %v1479_v42 }
 0x2d3   :  { %1404 = vmatpush3.msra.mxu1 %v1723_v52 }
 0x2d4   :  { %1405 = vmatprep.subr.mxu1 %v1479_v42 }
 0x2d5   :  { %1406 = vmatpush3.msra.mxu1 %v1730_v53 }
 0x2d6   :  { %1407 = vmatprep.subr.mxu1 %v1479_v42 }
 0x2d7   :  { %1408 = vmatpush3.msra.mxu1 %v1737_v54 }
 0x2d8   :  { %1409 = vmatprep.subr.mxu1 %v1479_v42 }
 0x2d9   :  { %1410 = vmatpush3.msra.mxu1 %v1743_v55 }
 0x2da   :  { %1411 = vmatprep.subr.mxu1 %v1479_v42 }
 0x2db   :  { %1412 = vmatpush3.msra.mxu1 %v1749_v56 }
 0x2dc   :  { %1413 = vmatprep.subr.mxu1 %v1479_v42 }
 0x2dd   :  { %1414 = vmatpush3.msra.mxu1 %v1760_v57 }
 0x2de   :  { %1415 = vmatprep.subr.mxu1 %v1479_v42 }
 0x2df   :  { %1416 = vmatpush3.msra.mxu1 %v1767_v58 }
 0x37f   :  { %v1264_v43 = vpop.f32.mrf.mxu1 }
 0x380   :  { %v1383_v44 = vpop.f32.mrf.mxu0 }
 0x381   :  { %v1265_v45 = vpop.f32.mrf.mxu1 }
 0x382   :  { %v876_v46 = vpop.f32.mrf.mxu0  ;;  %v1266_v51 = vadd.f32 %v1265_v45, %v1264_v43 }
 0x383   :  { %v1267_v47 = vpop.f32.mrf.mxu1 }
 0x384   :  { %v1384_v48 = vpop.f32.mrf.mxu0  ;;  %v877_v56 = vadd.f32 %v1266_v51, %v876_v46 }
 0x385   :  { %v1268_v49 = vpop.f32.mrf.mxu1 }
 0x386   :  { %v879_v50 = vpop.f32.mrf.mxu0  ;;  %v1269_v52 = vadd.f32 %v1268_v49, %v1267_v47  ;;  %v900_v58 = vmul.f32 %v877_v56, %v877_v56 }
 0x388   :  { %v1270_v53 = vpop.f32.mrf.mxu1  ;;  %v880_v54 = vadd.f32 %v1269_v52, %v879_v50 }
 0x38a   :  { %v1271_v55 = vpop.f32.mrf.mxu1  ;;  %v901_v38 = vmul.f32 %v880_v54, %v880_v54  ;;  %v891_v40 = vadd.f32 %v880_v54, %v877_v56 }
 0x38b   :  { %v1272_v59 = vadd.f32 %v1271_v55, %v1270_v53 }
 0x38c   :  { %v1273_v57 = vpop.f32.mrf.mxu1  ;;  %v904_v61 = vadd.f32 %v901_v38, %v900_v58 }
 0x38d   :  { %v885_v42 = vadd.f32 %v1383_v44, %v1272_v59 }
 0x38e   :  { %v1274_v39 = vpop.f32.mrf.mxu1 }
 0x38f   :  { %v902_v41 = vmul.f32 %v885_v42, %v885_v42  ;;  %v1275_v60 = vadd.f32 %v1274_v39, %v1273_v57  ;;  %v892_v62 = vadd.f32 %v891_v40, %v885_v42 }
 0x391   :  { %v888_v63 = vadd.f32 %v1384_v48, %v1275_v60  ;;  %v905_v0 = vadd.f32 %v904_v61, %v902_v41 }
 0x393   :  { %v893_v2 = vadd.f32 %v892_v62, %v888_v63  ;;  %v903_v3 = vmul.f32 %v888_v63, %v888_v63 }
 0x395   :  { %v894_v4 = vrot.slane %v893_v2, 4  ;;  %v906_v5 = vadd.f32 %v905_v0, %v903_v3 }
 0x397   :  { %v895_v7 = vadd.f32 %v894_v4, %v893_v2  ;;  %v907_v9 = vrot.slane %v906_v5, 4 }
 0x399   :  { %v896_v10 = vrot.slane %v895_v7, 2  ;;  %v908_v11 = vadd.f32 %v907_v9, %v906_v5 }
 0x39b   :  { %v897_v13 = vadd.f32 %v896_v10, %v895_v7  ;;  %v909_v15 = vrot.slane %v908_v11, 2 }
 0x39d   :  { %v898_v16 = vrot.slane %v897_v13, 1  ;;  %v910_v17 = vadd.f32 %v909_v15, %v908_v11 }
 0x39f   :  { %v911_v19 = vrot.slane %v910_v17, 1  ;;  %v899_v23 = vadd.f32 %v898_v16, %v897_v13 }
 0x3a1   :  { %v912_v24 = vadd.f32 %v911_v19, %v910_v17 }
 0x3a3   :  { %v913_v25 = vsel %vm363_vm1, %v899_v23, %v912_v24 }
 0x3a4   :  { %1418 = vmatmul.mubr.f32.vlgmr.msra.gmra.mxu1 %v913_v25 }
 0x464   :  { %v996_v26 = vpop.f32.mrf.mxu1 }
 0x465   :  { %v1000_v8 = vmul.f32 0.001953125, %v996_v26 }
 0x466   :  { %v1419_v6 = vpop.f32.mrf.mxu1 }
 0x467   :  { %v1001_v27 = vmul.f32 %v1000_v8, %v1000_v8 }
 0x469   :  { %v1003_v12 = vrot.slane %v1001_v27, 7 }
 0x46b   :  { %v1005_v28 = vsub.f32 %v1000_v8, %v1003_v12 }
 0x46d   :  { %v1006_v20 = vadd.f32 1e-05, %v1005_v28 }
 0x46f   :  { %1477 = vrsqrt.f32 %v1006_v20 }
 0x47c   :  { %v1478_v30 = vpop.eup %1477 }
 0x47d   :  { %v1015_v31 = vmul.f32 %v1478_v30, %v1189_v29 }
 0x47f   :  { %v1018_v32 = vrot.slane %v1015_v31, 1 }
 0x481   :  { %v1020_v36 = vmul.f32 %v1018_v32, %v1000_v8 }
 0x483   :  { %v1021_v37 = vsub.f32 %v1016_v33, %v1020_v36 }
 0x485   :  { %v1026_v43 = vrot.slane %v1021_v37, %v1820_v18 }
 0x487   :  { %v1028_v44 = vsel %vm363_vm1, %v1018_v32, %v1026_v43 }
 0x488   :  { %1423 = vmatmul.mubr.msk.f32.vlgmr.msra.gmra.mxu0 %vm481_vm2, %v1028_v44 }
 0x548   :  { %v1099_v45 = vpop.f32.mrf.mxu0 }
 0x549   :  { %v1106_v46 = vrot.slane %v1099_v45, %v1820_v18  ;;  %v1114_v47 = vrot.slane %v1099_v45, %v565_v1 }
 0x54a   :  { %v1424_v48 = vpop.f32.mrf.mxu0 }
 0x54b   :  { %v1107_v49 = vmul.f32 %v1106_v46, %v877_v56  ;;  %v1108_v50 = vmul.f32 %v1106_v46, %v880_v54  ;;  %v1109_v51 = vmul.f32 %v1106_v46, %v885_v42  ;;  %v1110_v52 = vmul.f32 %v1106_v46, %v888_v63 }
 0x54d   :  { %v1115_v53 = vadd.f32 %v1114_v47, %v1107_v49  ;;  %v1116_v55 = vadd.f32 %v1114_v47, %v1108_v50  ;;  %v1117_v59 = vadd.f32 %v1114_v47, %v1109_v51  ;;  %v1118_v57 = vadd.f32 %v1114_v47, %v1110_v52 }
 0x54f   :  { %v1123_v38 = vadd.f32 %v1115_v53, %v1597_v21  ;;  %v1124_v39 = vadd.f32 %v1116_v55, %v1602_v22  ;;  %v1125_v58 = vadd.f32 %v1117_v59, %v1636_v34  ;;  %v1126_v18 = vadd.f32 %v1118_v57, %v1641_v35 }
 0x551   :  { %v1127_v40 = vmax.f32 %v1123_v38, 0.0  ;;  %v1128_v14 = vmax.f32 %v1124_v39, 0.0  ;;  %v1129_v1 = vmax.f32 %v1125_v58, 0.0  ;;  %v1130_v41 = vmax.f32 %v1126_v18, 0.0 }
 0x553   :  { %1131 = vst [vmem:[%s1969_s9] sm:$0xff] %v1127_v40  ;;  %1132 = vst [vmem:[%s1969_s9 + $0x8] sm:$0xff] %v1128_v14 }
 0x554   :  { %1133 = vst [vmem:[%s1969_s9 + $0x10] sm:$0xff] %v1129_v1  ;;  %1134 = vst [vmem:[%s1969_s9 + $0x18] sm:$0xff] %v1130_v41 }

</bundles_post_ra>
